<compile_context>
chip_gen: v5e
topology: v5e:2x2
jax: 0.10.0
libtpu: 0.0.40
codegen_flags: <defaults>
</compile_context>

<pallas_src>
import jax
import jax.numpy as jnp
from jax.experimental import pallas as pl
from jax.experimental.pallas import tpu as pltpu

_LANE = 128        # lane width: K (contraction) and tm (spatial) pad to this
_TM_CAP = 4096     # max spatial columns per grid step


# ----------------------------- helpers ---------------------------------------

def _round_up(x, m):
    return ((x + m - 1) // m) * m


def _vmem_plan():
    """(planning budget, scoped-VMEM limit) in bytes, generation aware."""
    kind = ""
    try:
        kind = jax.devices()[0].device_kind.lower()
    except Exception:
        pass
    if ("v3" in kind) or ("v4" in kind) or ("v5" in kind):
        limit = 28 << 20      # older parts: modest scoped-VMEM request
    else:
        limit = 40 << 20      # v6e (128 MiB phys) / v7x (64 MiB phys)
    return limit - (12 << 20), limit


def _plan_m(s, tm_cap, batch):
    """Pick (tm, nm): lane-dense tiles, >= 4 parallel grid steps when possible."""
    nm = -(-s // tm_cap)
    if batch * nm < 4:  # give multi-TensorCore parts balanced parallel work
        nm = max(nm, min(-(-4 // batch), -(-s // 256)))
    nm = max(nm, 1)
    tm = _round_up(-(-s // nm), _LANE)
    nm = -(-s // tm)
    return tm, nm


# ----------------------------- Pallas kernels --------------------------------

def _proj_kernel(w_ref, p_ref, b_ref, o_ref):
    # w (E, K) bf16 | p (1, K, tm) bf16 | b (E, 1) f32 | o (1, E, tm)
    acc = jnp.dot(w_ref[...], p_ref[0], preferred_element_type=jnp.float32)
    o_ref[0] = (acc + b_ref[...]).astype(o_ref.dtype)


def _proj_kernel_ksplit(w_ref, p_ref, b_ref, o_ref):
    # grid (B, m, k); k is the reduction axis; o_ref (f32) is resident across k,
    # so accumulate into it directly (bias folded into the k==0 init).
    @pl.when(pl.program_id(2) == 0)
    def _():
        o_ref[0] = jnp.broadcast_to(b_ref[...], o_ref.shape[1:])

    o_ref[0] += jnp.dot(w_ref[...], p_ref[0], preferred_element_type=jnp.float32)


# ----------------------------- projection wrapper -----------------------------

def _patch_proj(patches, w_ek, bias2d, out_dtype=jnp.float32):
    """patches (B, K, S), w_ek (E_pad, K_pad), bias2d (E_pad, 1) f32
       -> (B, E_pad, S_pad); f32 whenever the K axis is split."""
    B, K, S = patches.shape
    E_pad, K_pad = w_ek.shape
    p_bytes = patches.dtype.itemsize
    w_bytes = w_ek.dtype.itemsize

    budget, vmem_limit = _vmem_plan()

    # --- tile planning --------------------------------------------------------
    fixed = E_pad * K_pad * w_bytes + E_pad * _LANE * 4        # resident weight + bias
    per_col = 2 * K_pad * p_bytes + 2 * E_pad * 4              # dbl-buffered patch/out cols
    tm_cap = (budget - fixed) // per_col

    if tm_cap >= _LANE:
        # Normal case: the whole (E_pad, K_pad) weight stays resident, nk == 1.
        nk, tk = 1, K_pad
        tm_cap = min(_TM_CAP, (tm_cap // _LANE) * _LANE)
    else:
        # Huge K only: split the reduction axis (weight becomes streamed).
        tm_cap = 256
        nk = max(2, -(-K_pad // 2048))
        tk = _round_up(-(-K_pad // nk), _LANE)
        nk = -(-K_pad // tk)
        if nk * tk != K_pad:                                   # pad K only as far as needed
            w_ek = jnp.pad(w_ek, ((0, 0), (0, nk * tk - K_pad)))
            K_pad = nk * tk

    tm, nm = _plan_m(S, tm_cap, B)
    S_pad = nm * tm

    patches = jnp.pad(patches, ((0, 0), (0, K_pad - K), (0, S_pad - S)))

    # --- pallas call -----------------------------------------------------------
    if nk == 1:
        w_spec = pl.BlockSpec((E_pad, K_pad), lambda b, m: (0, 0))
        if E_pad * K_pad * w_bytes > (512 << 10):
            # Constant block index: single-buffer the big weight so the saved
            # VMEM can go to a larger row tile instead.
            w_spec = pl.BlockSpec((E_pad, K_pad), lambda b, m: (0, 0),
                                  pipeline_mode=pl.Buffered(1))
        out = pl.pallas_call(
            _proj_kernel,
            out_shape=jax.ShapeDtypeStruct((B, E_pad, S_pad), out_dtype),
            grid_spec=pltpu.PrefetchScalarGridSpec(
                num_scalar_prefetch=0,
                grid=(B, nm),
                in_specs=[
                    w_spec,
                    pl.BlockSpec((1, K_pad, tm), lambda b, m: (b, 0, m)),
                    pl.BlockSpec((E_pad, 1), lambda b, m: (0, 0)),
                ],
                out_specs=pl.BlockSpec((1, E_pad, tm), lambda b, m: (b, 0, m)),
            ),
            compiler_params=pltpu.CompilerParams(
                dimension_semantics=("parallel", "parallel"),
                vmem_limit_bytes=vmem_limit),
        )(w_ek, patches, bias2d)
        return out

    out = pl.pallas_call(
        _proj_kernel_ksplit,
        out_shape=jax.ShapeDtypeStruct((B, E_pad, S_pad), jnp.float32),
        grid_spec=pltpu.PrefetchScalarGridSpec(
            num_scalar_prefetch=0,
            grid=(B, nm, nk),
            in_specs=[
                pl.BlockSpec((E_pad, tk), lambda b, m, k: (0, k)),
                pl.BlockSpec((1, tk, tm), lambda b, m, k: (b, k, m)),
                pl.BlockSpec((E_pad, 1), lambda b, m, k: (0, 0)),
            ],
            out_specs=pl.BlockSpec((1, E_pad, tm), lambda b, m, k: (b, 0, m)),
        ),
        compiler_params=pltpu.CompilerParams(
            dimension_semantics=("parallel", "parallel", "arbitrary"),
            vmem_limit_bytes=vmem_limit),
    )(w_ek, patches, bias2d)
    if out_dtype != jnp.float32:
        out = out.astype(out_dtype)
    return out


# ----------------------------- Module wrapper ---------------------------------

class PatchEmbed3D:
    """JAX/Pallas port of the PyTorch PatchEmbed3D (norm_layer=None path)."""

    def __init__(self, patch_size=(2, 4, 4), in_chans=16, embed_dim=64,
                 key=None, compute_dtype=jnp.bfloat16, out_dtype=jnp.float32):
        self.patch_size = patch_size
        self.in_chans = in_chans
        self.embed_dim = embed_dim
        self.compute_dtype = compute_dtype
        self.out_dtype = out_dtype
        if key is None:
            key = jax.random.PRNGKey(0)
        k_w, k_b = jax.random.split(key)

        pd, ph, pw = patch_size
        fan_in = in_chans * pd * ph * pw
        bound = 1.0 / (fan_in ** 0.5)
        # Conv3d weight (E, C, kd, kh, kw), bias (E,) — deterministic init.
        self.weight = jax.random.uniform(
            k_w, (embed_dim, in_chans, pd, ph, pw),
            minval=-bound, maxval=bound, dtype=jnp.float32)
        self.bias = jax.random.uniform(
            k_b, (embed_dim,), minval=-bound, maxval=bound, dtype=jnp.float32)

        # Pre-packed MXU LHS (E_pad, K_pad): E needs only sublane (8) alignment,
        # K is lane-padded to 128 (only).
        self.K = fan_in
        self.K_pad = _round_up(fan_in, _LANE)
        self.E_pad = _round_up(embed_dim, 8)
        w_ek = self.weight.reshape(embed_dim, fan_in)
        w_ek = jnp.pad(w_ek, ((0, self.E_pad - embed_dim),
                              (0, self.K_pad - fan_in)))
        self.w_ek = w_ek.astype(compute_dtype)                     # (E_pad, K_pad)
        self.bias2d = jnp.pad(
            self.bias, (0, self.E_pad - embed_dim)
        ).reshape(self.E_pad, 1).astype(jnp.float32)
        # TODO(synk): fp8 operand path for the v7x MXU (accuracy-gated) not plumbed.
        # TODO(synk): norm_layer branch (LayerNorm, elementwise_affine=False) not
        # implemented; the default config uses norm=None.

    def __call__(self, x):
        # x: (B, C, D, H, W) float32 (NCDHW, like the PyTorch module)
        pd, ph, pw = self.patch_size
        B, C, D, H, W = x.shape

        # Right-pad spatial dims to patch multiples (matches the F.pad calls).
        pad_w, pad_h, pad_d = (-W) % pw, (-H) % ph, (-D) % pd
        if pad_w or pad_h or pad_d:
            x = jnp.pad(x, ((0, 0), (0, 0), (0, pad_d), (0, pad_h), (0, pad_w)))
        D, H, W = D + pad_d, H + pad_h, W + pad_w
        Dp, Hp, Wp = D // pd, H // ph, W // pw
        S = Dp * Hp * Wp

        # im2col to (B, K, S): K=(c,kd,kh,kw) on the contraction/sublane side,
        # flat spatial (dp,hp,wp) on lanes, so the kernel's (E, tm) tiles land
        # directly in the NCDHW-flat output layout (no output transpose).
        # TODO(synk): still one XLA pad+cast+transpose HBM pass; see header.
        xp = x.astype(self.compute_dtype).reshape(B, C, Dp, pd, Hp, ph, Wp, pw)
        xp = jnp.transpose(xp, (0, 1, 3, 5, 7, 2, 4, 6))   # (B, C,pd,ph,pw, Dp,Hp,Wp)
        patches = xp.reshape(B, self.K, S)

        out = _patch_proj(patches, self.w_ek, self.bias2d, self.out_dtype)
        out = out[:, :self.embed_dim, :S].reshape(B, self.embed_dim, Dp, Hp, Wp)
        return out                                           # (B, E, Dp, Hp, Wp)


# ----------------------------- Demo / check -----------------------------------

if __name__ == "__main__":
    key = jax.random.PRNGKey(0)
    kx, kp = jax.random.split(key)

    B, C, D, H, W = 2, 16, 4, 8, 8
    x = jax.random.normal(kx, (B, C, D, H, W), dtype=jnp.float32)

    module = PatchEmbed3D(patch_size=(2, 4, 4), in_chans=C, embed_dim=64, key=kp)
    fwd = jax.jit(lambda v: module(v))
    y = jax.block_until_ready(fwd(x))

    # Reference: strided Conv3d via lax on the same bf16-cast operands (the
    # kernel computes the matmul in bf16 with f32 accumulation by design).
    y_ref = jax.lax.conv_general_dilated(
        x.astype(jnp.bfloat16), module.weight.astype(jnp.bfloat16),
        window_strides=module.patch_size,
        padding="VALID",
        dimension_numbers=("NCDHW", "OIDHW", "NCDHW"),
        preferred_element_type=jnp.float32,
    ) + module.bias.reshape(1, -1, 1, 1, 1)

    assert y.shape == (B, 64, D // 2, H // 4, W // 4), y.shape
    max_err = float(jnp.max(jnp.abs(y - y_ref)))
    assert max_err < 2e-3, max_err
    print("KERNEL_OK")
</pallas_src>

<mosaic_0001>
module attributes {stable_mosaic.version = 11 : i64} {
  func.func @_proj_kernel(%arg0: i32, %arg1: i32, %arg2: memref<64x512xbf16, #tpu.memory_space<vmem>>, %arg3: memref<1x512x128xbf16, #tpu.memory_space<vmem>>, %arg4: memref<64x1xf32, #tpu.memory_space<vmem>>, %arg5: memref<1x64x128xf32, #tpu.memory_space<vmem>>) attributes {dimension_semantics = [#tpu.dimension_semantics<parallel>, #tpu.dimension_semantics<parallel>], iteration_bounds = array<i64: 2, 1>, scalar_prefetch = 0 : i64, scratch_operands = 0 : i64, tpu.core_type = #tpu.core_type<tc>, window_params = [{pipeline_mode = #tpu.pipeline_mode<synchronous>, transform_indices = @transform_0, window_bounds = array<i64: 64, 512>}, {transform_indices = @transform_1, window_bounds = array<i64: 1, 512, 128>}, {pipeline_mode = #tpu.pipeline_mode<synchronous>, transform_indices = @transform_2, window_bounds = array<i64: 64, 1>}, {transform_indices = @transform_3, window_bounds = array<i64: 1, 64, 128>}]} {
    %c0 = arith.constant 0 : index
    %c0_0 = arith.constant 0 : index
    %0 = vector.load %arg2[%c0, %c0_0] : memref<64x512xbf16, #tpu.memory_space<vmem>>, vector<64x512xbf16>
    %c0_1 = arith.constant 0 : index
    %c0_2 = arith.constant 0 : index
    %c0_3 = arith.constant 0 : index
    %1 = vector.load %arg3[%c0_1, %c0_2, %c0_3] : memref<1x512x128xbf16, #tpu.memory_space<vmem>>, vector<1x512x128xbf16>
    %2 = vector.shape_cast %1 : vector<1x512x128xbf16> to vector<512x128xbf16>
    %cst = arith.constant dense<0.000000e+00> : vector<64x128xf32>
    %3 = tpu.matmul %0, %2, %cst {dimension_numbers = #tpu.dot_dimension_numbers<[1], [0], [0], [1], [0, 0, 1, 1], [], []>} : vector<64x512xbf16>, vector<512x128xbf16>, vector<64x128xf32> -> vector<64x128xf32>
    %c0_4 = arith.constant 0 : index
    %c0_5 = arith.constant 0 : index
    %4 = vector.load %arg4[%c0_4, %c0_5] : memref<64x1xf32, #tpu.memory_space<vmem>>, vector<64x1xf32>
    %5 = vector.broadcast %4 : vector<64x1xf32> to vector<64x128xf32>
    %6 = arith.addf %3, %5 : vector<64x128xf32>
    %c0_6 = arith.constant 0 : index
    %c0_7 = arith.constant 0 : index
    %c0_8 = arith.constant 0 : index
    %7 = vector.load %arg5[%c0_6, %c0_7, %c0_8] : memref<1x64x128xf32, #tpu.memory_space<vmem>>, vector<1x64x128xf32>
    %8 = vector.shape_cast %7 : vector<1x64x128xf32> to vector<64x128xf32>
    %9 = vector.shape_cast %6 : vector<64x128xf32> to vector<1x64x128xf32>
    tpu.vector_store %arg5[%c0_6, %c0_7, %c0_8], %9 {strides = array<i32>} : memref<1x64x128xf32, #tpu.memory_space<vmem>>, vector<1x64x128xf32>,
    return
  }
  func.func @transform_0(%arg0: i32, %arg1: i32) -> (i32, i32) {
    %c0_i32 = arith.constant 0 : i32
    %c0_i32_0 = arith.constant 0 : i32
    %c0_i32_1 = arith.constant 0 : i32
    return %c0_i32, %c0_i32_0 : i32, i32
  }
  func.func @transform_1(%arg0: i32, %arg1: i32) -> (i32, i32, i32) {
    %c0_i32 = arith.constant 0 : i32
    %c0_i32_0 = arith.constant 0 : i32
    return %arg0, %c0_i32, %arg1 : i32, i32, i32
  }
  func.func @transform_2(%arg0: i32, %arg1: i32) -> (i32, i32) {
    %c0_i32 = arith.constant 0 : i32
    %c0_i32_0 = arith.constant 0 : i32
    %c0_i32_1 = arith.constant 0 : i32
    return %c0_i32, %c0_i32_0 : i32, i32
  }
  func.func @transform_3(%arg0: i32, %arg1: i32) -> (i32, i32, i32) {
    %c0_i32 = arith.constant 0 : i32
    %c0_i32_0 = arith.constant 0 : i32
    return %arg0, %c0_i32, %arg1 : i32, i32, i32
  }
}

</mosaic_0001>

<bundles_post_ra>
// kernel: _lambda_.1
= control target key start
LH: loop header
LB: loop body
LE: loop exit
PB: predicated region body
PF: predicated region fallthrough
CT: control target
= control target key end

     0   :  { %s1135_s12 = smov 0   ;;  %s1137_s13 = smov 0   ;;  %s1336_s0 = inlined_call_operand.vmem [shape: bf16[64,512], index: 0, kind: input, shape index: {}]   ;;  %s1337_s1 = inlined_call_operand.vmem [shape: bf16[2,512,128], index: 1, kind: input, shape index: {}]   ;;  %s1338_s2 = inlined_call_operand.vmem [shape: f32[64,1], index: 2, kind: input, shape index: {}]   ;;  %s1339_s3 = inlined_call_operand.vmem [shape: f32[2,64,128], index: 3, kind: output, shape index: {}]  }
   0x1   :  { %s1139_s14 = smov 0  }
   0x2 LB: > { %s25_s15 = sadd.s32 1, %s1108_s13  ;;  %p813_p0 = scmp.ge.s32.totalorder %s1112_s14, 1  ;;  %s1112_s14 = sphi %s1139_s14, %s13_s14   ;;  %s1108_s13 = sphi %s1137_s13, %s1341_s13   ;;  %s1104_s12 = sphi %s1135_s12, %s1340_s12  }
   0x3   : > { %p27_p1 = scmp.ge.s32.totalorder %s25_s15, 2  ;;  %p156_p2 = scmp.lt.s32.totalorder %s1112_s14, 3 }
   0x5   : > { %s1343_s15 = smov (%p27_p1, %s25_s15), 0  ;;  %p157_p3 = pnand %p813_p0, %p156_p2 }
   0x6   : > { %p186_p4 = scmp.lt.s32.totalorder (!%p157_p3), %s1104_s12, 1 }
   0x7   : > { %160 = sbr.rel (%p157_p3) target bundleno = 242 (0xf2), region = 32 }
   0xc   : > { %s1345_s12 = smov (!%p186_p4, %s1104_s12), 1  ;;  %v1114_v8 = vmov 0   ;;  %v282_v17 = vld [vmem:[%s1338_s2] sm:$0xff]  ;;  %v283_v24 = vld [vmem:[%s1338_s2 + $0x8] sm:$0xff]  ;;  %v284_v25 = vld [vmem:[%s1338_s2 + $0x10] sm:$0xff] }
   0xd   : > { %s1012_s16 = sshll.u32 %s1345_s12, 8  ;;  %1087 = vset.pattern.permute.xlu0 %v1114_v8  ;;  %1088 = vset.pattern.permute.xlu1 %v1114_v8  ;;  %v820_v32 = vld [vmem:[%s1336_s0] sm:$0xf]  ;;  %v1016_v33 = vld [vmem:[%s1336_s0 + $0xc] sm:$0xf0]  ;;  %v285_v48 = vld [vmem:[%s1338_s2 + $0x18] sm:$0xff] }
   0xe   : > { %s1159_s19 = scalar_lea.vmem %s1337_s1, %s1012_s16  ;;  %1089 = vset.pattern.permute.xlu2 %v1114_v8  ;;  %292 = vperm.xlu0 %1087, %v282_v17   ;;  %v1014_v34 = vld [vmem:[%s1336_s0 + $0x4] sm:$0xf]  ;;  %v822_v39 = vld [vmem:[%s1336_s0 + $0x10] sm:$0xf0]  ;;  %v828_v40 = vld [vmem:[%s1336_s0 + $0x8] sm:$0xf]  ;;  %v821_v44 = vor.u32 %v1016_v33, %v820_v32 }
   0xf   : > { %v1037_v0 = vld [vmem:[%s1159_s19 + $0x38] sm:$0xff]  ;;  %v1036_v4 = vld [vmem:[%s1159_s19 + $0x30] sm:$0xff]  ;;  %v1035_v9 = vld [vmem:[%s1159_s19 + $0x28] sm:$0xff]  ;;  %302 = vperm.xlu1 %1088, %v284_v25   ;;  %v825_v45 = vor.u32 %v1014_v34, %v822_v39  ;;  %s1013_s4 = sshll.u32 %s1345_s12, 6 }
  0x10   : > { %v1045_v1 = vld [vmem:[%s1159_s19 + $0x78] sm:$0xff]  ;;  %602 = vmatpush.bf16.msra.mxu0 %v1037_v0  ;;  %v1044_v5 = vld [vmem:[%s1159_s19 + $0x70] sm:$0xff]  ;;  %v1043_v10 = vld [vmem:[%s1159_s19 + $0x68] sm:$0xff]  ;;  %s1317_s7 = scalar_lea.vmem %s1339_s3, %s1013_s4 }
  0x11   : > { %v1053_v2 = vld [vmem:[%s1159_s19 + $0xb8] sm:$0xff]  ;;  %631 = vmatpush.bf16.msra.mxu1 %v1045_v1  ;;  %v1052_v6 = vld [vmem:[%s1159_s19 + $0xb0] sm:$0xff]  ;;  %v1051_v11 = vld [vmem:[%s1159_s19 + $0xa8] sm:$0xff] }
  0x12   : > { %v1061_v3 = vld [vmem:[%s1159_s19 + $0xf8] sm:$0xff]  ;;  %660 = vmatpush.bf16.msra.mxu2 %v1053_v2  ;;  %v1060_v7 = vld [vmem:[%s1159_s19 + $0xf0] sm:$0xff]  ;;  %v1059_v12 = vld [vmem:[%s1159_s19 + $0xe8] sm:$0xff] }
  0x13   : > { %689 = vmatpush.bf16.msra.mxu3 %v1061_v3  ;;  %v1034_v13 = vld [vmem:[%s1159_s19 + $0x20] sm:$0xff]  ;;  %v1033_v18 = vld [vmem:[%s1159_s19 + $0x18] sm:$0xff]  ;;  %v1032_v22 = vld [vmem:[%s1159_s19 + $0x10] sm:$0xff] }
  0x14   : > { %603 = vmatpush.bf16.msra.mxu0 %v1036_v4  ;;  %v1042_v14 = vld [vmem:[%s1159_s19 + $0x60] sm:$0xff]  ;;  %v1041_v19 = vld [vmem:[%s1159_s19 + $0x58] sm:$0xff]  ;;  %v1040_v23 = vld [vmem:[%s1159_s19 + $0x50] sm:$0xff] }
  0x15   : > { %632 = vmatpush.bf16.msra.mxu1 %v1044_v5  ;;  %v1050_v15 = vld [vmem:[%s1159_s19 + $0xa0] sm:$0xff]  ;;  %v1049_v20 = vld [vmem:[%s1159_s19 + $0x98] sm:$0xff]  ;;  %v1048_v26 = vld [vmem:[%s1159_s19 + $0x90] sm:$0xff] }
  0x16   : > { %661 = vmatpush.bf16.msra.mxu2 %v1052_v6  ;;  %v1058_v16 = vld [vmem:[%s1159_s19 + $0xe0] sm:$0xff]  ;;  %v1057_v21 = vld [vmem:[%s1159_s19 + $0xd8] sm:$0xff]  ;;  %v1056_v27 = vld [vmem:[%s1159_s19 + $0xd0] sm:$0xff]  ;;  %297 = vperm.xlu0 %1087, %v283_v24  }
  0x17   : > { %690 = vmatpush.bf16.msra.mxu3 %v1060_v7  ;;  %v1031_v28 = vld [vmem:[%s1159_s19 + $0x8] sm:$0xff]  ;;  %v1030_v35 = vld [vmem:[%s1159_s19] sm:$0xff]  ;;  %v1017_v41 = vld [vmem:[%s1336_s0 + $0x14] sm:$0xf0]  ;;  %307 = vperm.xlu1 %1088, %v285_v48  }
  0x18   : > { %604 = vmatpush.bf16.msra.mxu0 %v1035_v9  ;;  %v1039_v29 = vld [vmem:[%s1159_s19 + $0x48] sm:$0xff]  ;;  %v1038_v36 = vld [vmem:[%s1159_s19 + $0x40] sm:$0xff]  ;;  %v830_v43 = vld [vmem:[%s1336_s0 + $0x18] sm:$0xf0]  ;;  %v829_v46 = vor.u32 %v1017_v41, %v828_v40 }
  0x19   : > { %633 = vmatpush.bf16.msra.mxu1 %v1043_v10  ;;  %v1047_v30 = vld [vmem:[%s1159_s19 + $0x88] sm:$0xff]  ;;  %v1046_v37 = vld [vmem:[%s1159_s19 + $0x80] sm:$0xff]  ;;  %v1020_v50 = vld [vmem:[%s1336_s0 + $0x2c] sm:$0xf0] }
  0x1a   : > { %662 = vmatpush.bf16.msra.mxu2 %v1051_v11  ;;  %v1055_v31 = vld [vmem:[%s1159_s19 + $0xc8] sm:$0xff]  ;;  %v1054_v38 = vld [vmem:[%s1159_s19 + $0xc0] sm:$0xff]  ;;  %v838_v52 = vld [vmem:[%s1336_s0 + $0x30] sm:$0xf0] }
  0x1b   : > { %691 = vmatpush.bf16.msra.mxu3 %v1059_v12  ;;  %v1015_v42 = vld [vmem:[%s1336_s0 + $0xc] sm:$0xf]  ;;  %v836_v49 = vld [vmem:[%s1336_s0 + $0x20] sm:$0xf]  ;;  %v1018_v51 = vld [vmem:[%s1336_s0 + $0x24] sm:$0xf] }
  0x1c   : > { %605 = vmatpush.bf16.msra.mxu0 %v1034_v13  ;;  %v833_v47 = vor.u32 %v1015_v42, %v830_v43  ;;  %v844_v53 = vld [vmem:[%s1336_s0 + $0x28] sm:$0xf]  ;;  %v1021_v54 = vld [vmem:[%s1336_s0 + $0x34] sm:$0xf0]  ;;  %v1019_v55 = vld [vmem:[%s1336_s0 + $0x2c] sm:$0xf]  ;;  %v837_v57 = vor.u32 %v1020_v50, %v836_v49  ;;  %v841_v58 = vor.u32 %v1018_v51, %v838_v52 }
  0x1d   : > { %634 = vmatpush.bf16.msra.mxu1 %v1042_v14  ;;  %v846_v56 = vld [vmem:[%s1336_s0 + $0x38] sm:$0xf0]  ;;  %v845_v59 = vor.u32 %v1021_v54, %v844_v53  ;;  %v288_v62 = vld [vmem:[%s1338_s2 + $0x30] sm:$0xff]  ;;  %v286_v63 = vld [vmem:[%s1338_s2 + $0x20] sm:$0xff] }
  0x1e   : > { %663 = vmatpush.bf16.msra.mxu2 %v1050_v15  ;;  %v849_v60 = vor.u32 %v1019_v55, %v846_v56  ;;  %v289_v61 = vld [vmem:[%s1338_s2 + $0x38] sm:$0xff]  ;;  %322 = vperm.xlu0 %1087, %v288_v62   ;;  %v852_v0 = vld [vmem:[%s1336_s0 + $0x40] sm:$0xf]  ;;  %v1024_v1 = vld [vmem:[%s1336_s0 + $0x4c] sm:$0xf0] }
  0x1f   : > { %692 = vmatpush.bf16.msra.mxu3 %v1058_v16  ;;  %327 = vperm.xlu1 %1088, %v289_v61   ;;  %v287_v2 = vld [vmem:[%s1338_s2 + $0x28] sm:$0xff]  ;;  %v1022_v3 = vld [vmem:[%s1336_s0 + $0x44] sm:$0xf]  ;;  %v854_v4 = vld [vmem:[%s1336_s0 + $0x50] sm:$0xf0]  ;;  %v853_v9 = vor.u32 %v1024_v1, %v852_v0 }
  0x20   : > { %606 = vmatpush.bf16.msra.mxu0 %v1033_v18  ;;  %312 = vperm.xlu2 %1089, %v286_v63   ;;  %v860_v5 = vld [vmem:[%s1336_s0 + $0x48] sm:$0xf]  ;;  %v1025_v6 = vld [vmem:[%s1336_s0 + $0x54] sm:$0xf0]  ;;  %v1023_v7 = vld [vmem:[%s1336_s0 + $0x4c] sm:$0xf]  ;;  %v857_v10 = vor.u32 %v1022_v3, %v854_v4 }
  0x21   : > { %635 = vmatpush.bf16.msra.mxu1 %v1041_v19  ;;  %v862_v8 = vld [vmem:[%s1336_s0 + $0x58] sm:$0xf0]  ;;  %v861_v11 = vor.u32 %v1025_v6, %v860_v5  ;;  %v868_v13 = vld [vmem:[%s1336_s0 + $0x60] sm:$0xf]  ;;  %v1028_v14 = vld [vmem:[%s1336_s0 + $0x6c] sm:$0xf0] }
  0x22   : > { %664 = vmatpush.bf16.msra.mxu2 %v1049_v20  ;;  %v865_v12 = vor.u32 %v1023_v7, %v862_v8  ;;  %v1026_v15 = vld [vmem:[%s1336_s0 + $0x64] sm:$0xf]  ;;  %v870_v16 = vld [vmem:[%s1336_s0 + $0x70] sm:$0xf0]  ;;  %v876_v17 = vld [vmem:[%s1336_s0 + $0x68] sm:$0xf] }
  0x23   : > { %693 = vmatpush.bf16.msra.mxu3 %v1057_v21  ;;  %v1029_v18 = vld [vmem:[%s1336_s0 + $0x74] sm:$0xf0]  ;;  %v1027_v19 = vld [vmem:[%s1336_s0 + $0x6c] sm:$0xf]  ;;  %v878_v20 = vld [vmem:[%s1336_s0 + $0x78] sm:$0xf0]  ;;  %v869_v21 = vor.u32 %v1028_v14, %v868_v13 }
  0x24   : > { %607 = vmatpush.bf16.msra.mxu0 %v1032_v22  ;;  %v873_v22 = vor.u32 %v1026_v15, %v870_v16  ;;  %v881_v24 = vor.u32 %v1027_v19, %v878_v20 }
  0x25   : > { %636 = vmatpush.bf16.msra.mxu1 %v1040_v23  ;;  %v877_v23 = vor.u32 %v1029_v18, %v876_v17 }
  0x26   : > { %665 = vmatpush.bf16.msra.mxu2 %v1048_v26 }
  0x27   : > { %694 = vmatpush.bf16.msra.mxu3 %v1056_v27 }
  0x28   : > { %608 = vmatpush.bf16.msra.mxu0 %v1031_v28  ;;  %317 = vperm.xlu2 %1089, %v287_v2  }
  0x29   : > { %637 = vmatpush.bf16.msra.mxu1 %v1039_v29 }
  0x2a   : > { %666 = vmatpush.bf16.msra.mxu2 %v1047_v30 }
  0x2b   : > { %695 = vmatpush.bf16.msra.mxu3 %v1055_v31 }
  0x2c   : > { %609 = vmatpush.bf16.msra.mxu0 %v1030_v35 }
  0x2d   : > { %638 = vmatpush.bf16.msra.mxu1 %v1038_v36 }
  0x2e   : > { %667 = vmatpush.bf16.msra.mxu2 %v1046_v37 }
  0x2f   : > { %696 = vmatpush.bf16.msra.mxu3 %v1054_v38  ;;  %610 = vmatmul.bf16.vlgmr.msra.gmra.mxu0 %v821_v44 }
  0x30   : > { %639 = vmatmul.bf16.vlgmr.msra.gmra.mxu1 %v825_v45 }
  0x31   : > { %668 = vmatmul.bf16.vlgmr.msra.gmra.mxu2 %v829_v46 }
  0x32   : > { %697 = vmatmul.bf16.vlgmr.msra.gmra.mxu3 %v833_v47 }
  0x3f   : > { %615 = vmatmul.bf16.gmra.mxu0 %v837_v57 }
  0x40   : > { %644 = vmatmul.bf16.gmra.mxu1 %v841_v58 }
  0x41   : > { %673 = vmatmul.bf16.gmra.mxu2 %v845_v59 }
  0x42   : > { %702 = vmatmul.bf16.gmra.mxu3 %v849_v60 }
  0x4f   : > { %620 = vmatmul.bf16.gmra.mxu0 %v853_v9 }
  0x50   : > { %649 = vmatmul.bf16.gmra.mxu1 %v857_v10 }
  0x51   : > { %678 = vmatmul.bf16.gmra.mxu2 %v861_v11 }
  0x52   : > { %707 = vmatmul.bf16.gmra.mxu3 %v865_v12 }
  0x5f   : > { %625 = vmatmul.bf16.gmra.mxu0 %v869_v21 }
  0x60   : > { %654 = vmatmul.bf16.gmra.mxu1 %v873_v22 }
  0x61   : > { %683 = vmatmul.bf16.gmra.mxu2 %v877_v23 }
  0x62   : > { %712 = vmatmul.bf16.gmra.mxu3 %v881_v24 }
  0x7a   : > { %v313_v56 = vpop.permute.xlu2 %312 }
  0x80   : > { %v293_v25 = vpop.permute.xlu0 %292 }
  0x81   : > { %v303_v38 = vpop.permute.xlu1 %302 }
  0x82   : > { %v318_v2 = vpop.permute.xlu2 %317 }
  0x88   : > { %v298_v30 = vpop.permute.xlu0 %297 }
  0x89   : > { %v308_v48 = vpop.permute.xlu1 %307 }
  0x90   : > { %v323_v15 = vpop.permute.xlu0 %322 }
  0x91   : > { %v328_v24 = vpop.permute.xlu1 %327 }
  0xac   : > { %v611_v26 = vpop.f32.mrf.mxu0 }
  0xad   : > { %v640_v27 = vpop.f32.mrf.mxu1  ;;  %v612_v28 = vadd.f32 %v611_v26, %v293_v25 }
  0xaf   : > { %v641_v29 = vadd.f32 %v640_v27, %v612_v28 }
  0xb4   : > { %v669_v31 = vpop.f32.mrf.mxu2  ;;  %v613_v34 = vpop.f32.mrf.mxu0 }
  0xb5   : > { %v698_v32 = vpop.f32.mrf.mxu3  ;;  %v670_v33 = vadd.f32 %v669_v31, %v641_v29  ;;  %v642_v35 = vpop.f32.mrf.mxu1  ;;  %v614_v37 = vadd.f32 %v613_v34, %v298_v30 }
  0xb7   : > { %v699_v36 = vadd.f32 %v698_v32, %v670_v33  ;;  %v643_v39 = vadd.f32 %v642_v35, %v614_v37 }
  0xb9   : > { %718 = vst [vmem:[%s1317_s7] sm:$0xff] %v699_v36 }
  0xbc   : > { %v671_v40 = vpop.f32.mrf.mxu2  ;;  %v616_v43 = vpop.f32.mrf.mxu0 }
  0xbd   : > { %v700_v41 = vpop.f32.mrf.mxu3  ;;  %v672_v42 = vadd.f32 %v671_v40, %v643_v39  ;;  %v645_v44 = vpop.f32.mrf.mxu1  ;;  %v617_v45 = vadd.f32 %v616_v43, %v303_v38 }
  0xbf   : > { %v701_v46 = vadd.f32 %v700_v41, %v672_v42  ;;  %v646_v47 = vadd.f32 %v645_v44, %v617_v45 }
  0xc1   : > { %719 = vst [vmem:[%s1317_s7 + $0x8] sm:$0xff] %v701_v46 }
  0xc4   : > { %v674_v49 = vpop.f32.mrf.mxu2  ;;  %v618_v52 = vpop.f32.mrf.mxu0 }
  0xc5   : > { %v703_v50 = vpop.f32.mrf.mxu3  ;;  %v675_v51 = vadd.f32 %v674_v49, %v646_v47  ;;  %v647_v53 = vpop.f32.mrf.mxu1  ;;  %v619_v55 = vadd.f32 %v618_v52, %v308_v48 }
  0xc7   : > { %v704_v54 = vadd.f32 %v703_v50, %v675_v51  ;;  %v648_v57 = vadd.f32 %v647_v53, %v619_v55 }
  0xc9   : > { %720 = vst [vmem:[%s1317_s7 + $0x10] sm:$0xff] %v704_v54 }
  0xcc   : > { %v676_v58 = vpop.f32.mrf.mxu2  ;;  %v621_v61 = vpop.f32.mrf.mxu0 }
  0xcd   : > { %v705_v59 = vpop.f32.mrf.mxu3  ;;  %v677_v60 = vadd.f32 %v676_v58, %v648_v57  ;;  %v650_v62 = vpop.f32.mrf.mxu1  ;;  %v622_v63 = vadd.f32 %v621_v61, %v313_v56 }
  0xcf   : > { %v706_v0 = vadd.f32 %v705_v59, %v677_v60  ;;  %v651_v1 = vadd.f32 %v650_v62, %v622_v63 }
  0xd1   : > { %721 = vst [vmem:[%s1317_s7 + $0x18] sm:$0xff] %v706_v0 }
  0xd4   : > { %v679_v3 = vpop.f32.mrf.mxu2  ;;  %v623_v6 = vpop.f32.mrf.mxu0 }
  0xd5   : > { %v708_v4 = vpop.f32.mrf.mxu3  ;;  %v680_v5 = vadd.f32 %v679_v3, %v651_v1  ;;  %v652_v7 = vpop.f32.mrf.mxu1  ;;  %v624_v9 = vadd.f32 %v623_v6, %v318_v2 }
  0xd7   : > { %v709_v8 = vadd.f32 %v708_v4, %v680_v5  ;;  %v653_v10 = vadd.f32 %v652_v7, %v624_v9 }
  0xd9   : > { %722 = vst [vmem:[%s1317_s7 + $0x20] sm:$0xff] %v709_v8 }
  0xdc   : > { %v681_v11 = vpop.f32.mrf.mxu2  ;;  %v626_v14 = vpop.f32.mrf.mxu0 }
  0xdd   : > { %v710_v12 = vpop.f32.mrf.mxu3  ;;  %v682_v13 = vadd.f32 %v681_v11, %v653_v10  ;;  %v627_v17 = vadd.f32 %v626_v14, %v323_v15  ;;  %v655_v18 = vpop.f32.mrf.mxu1 }
  0xdf   : > { %v711_v16 = vadd.f32 %v710_v12, %v682_v13  ;;  %v656_v19 = vadd.f32 %v655_v18, %v627_v17 }
  0xe1   : > { %723 = vst [vmem:[%s1317_s7 + $0x28] sm:$0xff] %v711_v16 }
  0xe4   : > { %v684_v20 = vpop.f32.mrf.mxu2  ;;  %v628_v23 = vpop.f32.mrf.mxu0 }
  0xe5   : > { %v713_v21 = vpop.f32.mrf.mxu3  ;;  %v685_v22 = vadd.f32 %v684_v20, %v656_v19  ;;  %v629_v26 = vadd.f32 %v628_v23, %v328_v24  ;;  %v657_v27 = vpop.f32.mrf.mxu1 }
  0xe7   : > { %v714_v25 = vadd.f32 %v713_v21, %v685_v22  ;;  %v658_v28 = vadd.f32 %v657_v27, %v629_v26 }
  0xe9   : > { %724 = vst [vmem:[%s1317_s7 + $0x30] sm:$0xff] %v714_v25 }
  0xec   : > { %v686_v29 = vpop.f32.mrf.mxu2 }
  0xed   : > { %v687_v30 = vadd.f32 %v686_v29, %v658_v28  ;;  %v715_v31 = vpop.f32.mrf.mxu3 }
  0xef   : > { %v716_v32 = vadd.f32 %v715_v31, %v687_v30 }
  0xf1   : > { %725 = vst [vmem:[%s1317_s7 + $0x38] sm:$0xff] %v716_v32 }
  0xf2 PF: > { %s13_s14 = sadd.s32 1, %s1112_s14   ;;  %s1340_s12 = smov %s1108_s13 }
  0xf3   : > { %p10_p5 = scmp.ge.s32.totalorder %s13_s14, 4   ;;  %s1341_s13 = smov %s1343_s15 }
  0xf5   :  { %12 = sbr.rel (!%p10_p5) target bundleno = 2 (0x2), region = 62 }

</bundles_post_ra>
